<compile_context>
chip_gen: v5e
topology: v5e:2x2
jax: 0.10.0
libtpu: 0.0.40
codegen_flags: <defaults>
</compile_context>

<pallas_src>
import jax
import jax.numpy as jnp
from jax.experimental import pallas as pl
from jax.experimental.pallas import tpu as pltpu


def _round_up(x, m):
    return (x + m - 1) // m * m


# ----------------------- fused embedding + GRU kernel ------------------------

def _fused_embed_gru_kernel(ids_ref, table_ref, h_ref, w_ref, b_ref, out_ref):
    """One batch tile: gather rows of `table` for `ids`, then one GRU step."""
    ids = ids_ref[...]                                   # (TB, 1) int32
    tb = ids.shape[0]
    v_pad = table_ref.shape[0]

    # Embedding lookup as a one-hot matmul (exact row selection on the MXU).
    onehot = (ids == jax.lax.broadcasted_iota(jnp.int32, (tb, v_pad), 1)
              ).astype(jnp.float32)                      # (TB, V_pad)
    x = jnp.dot(onehot, table_ref[...],
                preferred_element_type=jnp.float32)      # (TB, E_pad)

    h = h_ref[...]                                       # (TB, H_pad)
    hp = h.shape[-1]

    # Single MXU matmul for both gate projections:
    #   [x | h] @ [[W_ih_t, 0], [0, W_hh_t]] + [b_ih | b_hh]  -> [gi | gh]
    xh = jnp.concatenate([x, h], axis=-1)                # (TB, E_pad+H_pad)
    g = jnp.dot(xh, w_ref[...],
                preferred_element_type=jnp.float32) + b_ref[...]  # (TB, 6*H_pad)

    gi = g[:, :3 * hp]
    gh = g[:, 3 * hp:]

    # Gate boundaries are 128-lane aligned (hp is a multiple of 128).
    r = jax.nn.sigmoid(gi[:, :hp] + gh[:, :hp])
    z = jax.nn.sigmoid(gi[:, hp:2 * hp] + gh[:, hp:2 * hp])
    n = jnp.tanh(gi[:, 2 * hp:] + r * gh[:, 2 * hp:])

    out_ref[...] = ((1.0 - z) * n + z * h).astype(out_ref.dtype)


def fused_embed_gru(ids, state, table_pad, w_all, b_all, hidden_dim, h_pad):
    """ids: (N,) int32, state: (N, H) f32 -> (N, H) f32 new hidden state."""
    n = ids.shape[0]
    v_pad, e_pad = table_pad.shape

    # Batch tiling: multiples of 8 sublanes; 128-row tiles for big batches
    # (grid over batch is "parallel" -> shards across both v7x TensorCores).
    if n <= 128:
        n_pad = _round_up(n, 8)
        tb = n_pad
    else:
        n_pad = _round_up(n, 128)
        tb = 128

    ids2d = jnp.pad(ids.astype(jnp.int32), (0, n_pad - n)).reshape(n_pad, 1)
    h_in = jnp.pad(state.astype(jnp.float32),
                   ((0, n_pad - n), (0, h_pad - hidden_dim)))

    out = pl.pallas_call(
        _fused_embed_gru_kernel,
        out_shape=jax.ShapeDtypeStruct((n_pad, h_pad), jnp.float32),
        grid_spec=pltpu.PrefetchScalarGridSpec(
            num_scalar_prefetch=0,
            grid=(n_pad // tb,),
            in_specs=[
                pl.BlockSpec((tb, 1), lambda i: (i, 0)),          # ids
                pl.BlockSpec((v_pad, e_pad), lambda i: (0, 0)),   # table (resident)
                pl.BlockSpec((tb, h_pad), lambda i: (i, 0)),      # state
                pl.BlockSpec(w_all.shape, lambda i: (0, 0)),      # fused weights
                pl.BlockSpec(b_all.shape, lambda i: (0, 0)),      # fused bias
            ],
            out_specs=pl.BlockSpec((tb, h_pad), lambda i: (i, 0)),
        ),
        compiler_params=pltpu.CompilerParams(
            dimension_semantics=("parallel",),
            vmem_limit_bytes=64 * 1024 * 1024),
    )(ids2d, table_pad, h_in, w_all, b_all)

    return out[:n, :hidden_dim]


# ------------------------------ wrapper module --------------------------------

def _pad_gate_cols(w, h, h_pad):
    """(R, 3h) -> (R, 3*h_pad): move each gate block to its 128-aligned slot."""
    pad = ((0, 0), (0, h_pad - h))
    return jnp.concatenate(
        [jnp.pad(w[:, g * h:(g + 1) * h], pad) for g in range(3)], axis=1)


class SimpleEmbeddingWrapperPallas:
    """JAX/Pallas equivalent of SimpleEmbeddingWrapper(cell=GRUCell, embeddings)."""

    def __init__(self, vocab_size, embed_dim, hidden_dim, key):
        k0, k1, k2, k3, k4 = jax.random.split(key, 5)
        self.vocab_size = vocab_size
        self.embed_dim = embed_dim
        self.hidden_dim = hidden_dim

        s_e = 1.0 / jnp.sqrt(jnp.float32(embed_dim))
        s_h = 1.0 / jnp.sqrt(jnp.float32(hidden_dim))
        # Raw parameters (nn.Embedding table; GRUCell weights pre-transposed to
        # (in, 3H) so the kernel does row-major x @ W matmuls).
        self.table = (0.1 * jax.random.normal(k0, (vocab_size, embed_dim))
                      ).astype(jnp.float32)
        self.w_ih_t = (s_e * jax.random.normal(k1, (embed_dim, 3 * hidden_dim))
                       ).astype(jnp.float32)
        self.w_hh_t = (s_h * jax.random.normal(k2, (hidden_dim, 3 * hidden_dim))
                       ).astype(jnp.float32)
        self.b_ih = (s_h * jax.random.normal(k3, (1, 3 * hidden_dim))
                     ).astype(jnp.float32)
        self.b_hh = (s_h * jax.random.normal(k4, (1, 3 * hidden_dim))
                     ).astype(jnp.float32)

        # --- one-time padded / fused parameters for the kernel ---
        self.v_pad = _round_up(vocab_size, 128)
        self.e_pad = _round_up(embed_dim, 128)
        self.h_pad = _round_up(hidden_dim, 128)

        self.table_pad = jnp.pad(
            self.table,
            ((0, self.v_pad - vocab_size), (0, self.e_pad - embed_dim)))

        w_ih_p = jnp.pad(_pad_gate_cols(self.w_ih_t, hidden_dim, self.h_pad),
                         ((0, self.e_pad - embed_dim), (0, 0)))   # (E_pad, 3H_pad)
        w_hh_p = jnp.pad(_pad_gate_cols(self.w_hh_t, hidden_dim, self.h_pad),
                         ((0, self.h_pad - hidden_dim), (0, 0)))  # (H_pad, 3H_pad)

        w_all = jnp.zeros((self.e_pad + self.h_pad, 6 * self.h_pad), jnp.float32)
        w_all = w_all.at[:self.e_pad, :3 * self.h_pad].set(w_ih_p)
        w_all = w_all.at[self.e_pad:, 3 * self.h_pad:].set(w_hh_p)
        self.w_all = w_all                                        # (E_pad+H_pad, 6H_pad)
        self.b_all = jnp.concatenate(
            [_pad_gate_cols(self.b_ih, hidden_dim, self.h_pad),
             _pad_gate_cols(self.b_hh, hidden_dim, self.h_pad)], axis=1)  # (1, 6H_pad)

    def forward(self, inputs, state):
        # Flatten inputs (like the PyTorch wrapper's inputs.view(-1)); the cell
        # consumes the flattened batch, so state must be (prod(inputs.shape), H).
        ids_flat = inputs.reshape(-1).astype(jnp.int32)
        assert state.shape == (ids_flat.shape[0], self.hidden_dim)
        new_h = fused_embed_gru(ids_flat, state, self.table_pad,
                                self.w_all, self.b_all,
                                self.hidden_dim, self.h_pad)
        # TF-style cell interface (the module has zero_state): (output, new_state)
        return new_h, new_h

    def zero_state(self, batch_size, dtype):
        return jnp.zeros((batch_size, self.hidden_dim), dtype)


# ------------------------------ pure-JAX reference -----------------------------

def _reference(inputs, state, m):
    emb = m.table[inputs]
    gi = emb @ m.w_ih_t + m.b_ih
    gh = state @ m.w_hh_t + m.b_hh
    hid = m.hidden_dim
    r = jax.nn.sigmoid(gi[:, :hid] + gh[:, :hid])
    z = jax.nn.sigmoid(gi[:, hid:2 * hid] + gh[:, hid:2 * hid])
    n = jnp.tanh(gi[:, 2 * hid:] + r * gh[:, 2 * hid:])
    return (1.0 - z) * n + z * state


if __name__ == "__main__":
    B, V, E, H = 4, 16, 32, 32
    key = jax.random.PRNGKey(0)
    k_mod, k_ids, k_state = jax.random.split(key, 3)

    model = SimpleEmbeddingWrapperPallas(V, E, H, k_mod)
    inputs = jax.random.randint(k_ids, (B,), 0, V, dtype=jnp.int32)
    # Use a non-zero state so the z*h path is actually exercised.
    state = 0.1 * jax.random.normal(k_state, (B, H), dtype=jnp.float32)

    out, new_state = model.forward(inputs, state)
    out = jax.block_until_ready(out)
    new_state = jax.block_until_ready(new_state)

    ref = _reference(inputs, state, model)
    assert out.shape == (B, H) and new_state.shape == (B, H)
    assert jnp.allclose(out, ref, atol=1e-4, rtol=1e-4), \
        float(jnp.max(jnp.abs(out - ref)))
    print("KERNEL_OK")
</pallas_src>

<mosaic_0001>
module attributes {stable_mosaic.version = 11 : i64} {
  func.func @_fused_embed_gru_kernel(%arg0: i32, %arg1: memref<8x1xi32, #tpu.memory_space<vmem>>, %arg2: memref<128x128xf32, #tpu.memory_space<vmem>>, %arg3: memref<8x128xf32, #tpu.memory_space<vmem>>, %arg4: memref<256x768xf32, #tpu.memory_space<vmem>>, %arg5: memref<1x768xf32, #tpu.memory_space<vmem>>, %arg6: memref<8x128xf32, #tpu.memory_space<vmem>>) attributes {dimension_semantics = [#tpu.dimension_semantics<parallel>], iteration_bounds = array<i64: 1>, scalar_prefetch = 0 : i64, scratch_operands = 0 : i64, tpu.core_type = #tpu.core_type<tc>, window_params = [{transform_indices = @transform_0, window_bounds = array<i64: 8, 1>}, {pipeline_mode = #tpu.pipeline_mode<synchronous>, transform_indices = @transform_1, window_bounds = array<i64: 128, 128>}, {transform_indices = @transform_2, window_bounds = array<i64: 8, 128>}, {pipeline_mode = #tpu.pipeline_mode<synchronous>, transform_indices = @transform_3, window_bounds = array<i64: 256, 768>}, {pipeline_mode = #tpu.pipeline_mode<synchronous>, transform_indices = @transform_4, window_bounds = array<i64: 1, 768>}, {transform_indices = @transform_5, window_bounds = array<i64: 8, 128>}]} {
    %c0 = arith.constant 0 : index
    %c0_0 = arith.constant 0 : index
    %0 = vector.load %arg1[%c0, %c0_0] : memref<8x1xi32, #tpu.memory_space<vmem>>, vector<8x1xi32>
    %1 = tpu.iota {dimensions = array<i32: 1>} : vector<8x128xi32>
    %2 = vector.broadcast %0 : vector<8x1xi32> to vector<8x128xi32>
    %3 = arith.cmpi eq, %2, %1 : vector<8x128xi32>
    %4 = arith.extui %3 : vector<8x128xi1> to vector<8x128xi32>
    %5 = arith.sitofp %4 : vector<8x128xi32> to vector<8x128xf32>
    %c0_1 = arith.constant 0 : index
    %c0_2 = arith.constant 0 : index
    %6 = vector.load %arg2[%c0_1, %c0_2] : memref<128x128xf32, #tpu.memory_space<vmem>>, vector<128x128xf32>
    %cst = arith.constant dense<0.000000e+00> : vector<8x128xf32>
    %7 = tpu.matmul %5, %6, %cst {dimension_numbers = #tpu.dot_dimension_numbers<[1], [0], [0], [1], [0, 0, 1, 1], [], []>} : vector<8x128xf32>, vector<128x128xf32>, vector<8x128xf32> -> vector<8x128xf32>
    %c0_3 = arith.constant 0 : index
    %c0_4 = arith.constant 0 : index
    %8 = vector.load %arg3[%c0_3, %c0_4] : memref<8x128xf32, #tpu.memory_space<vmem>>, vector<8x128xf32>
    %9 = tpu.concatenate %7, %8 in 1 : vector<8x128xf32>, vector<8x128xf32> -> vector<8x256xf32>
    %c0_5 = arith.constant 0 : index
    %c0_6 = arith.constant 0 : index
    %10 = vector.load %arg4[%c0_5, %c0_6] : memref<256x768xf32, #tpu.memory_space<vmem>>, vector<256x768xf32>
    %cst_7 = arith.constant dense<0.000000e+00> : vector<8x768xf32>
    %11 = tpu.matmul %9, %10, %cst_7 {dimension_numbers = #tpu.dot_dimension_numbers<[1], [0], [0], [1], [0, 0, 1, 1], [], []>} : vector<8x256xf32>, vector<256x768xf32>, vector<8x768xf32> -> vector<8x768xf32>
    %c0_8 = arith.constant 0 : index
    %c0_9 = arith.constant 0 : index
    %12 = vector.load %arg5[%c0_8, %c0_9] : memref<1x768xf32, #tpu.memory_space<vmem>>, vector<1x768xf32>
    %13 = vector.broadcast %12 : vector<1x768xf32> to vector<8x768xf32>
    %14 = arith.addf %11, %13 : vector<8x768xf32>
    %15 = vector.extract_strided_slice %14 {offsets = [0, 0], sizes = [8, 384], strides = [1, 1]} : vector<8x768xf32> to vector<8x384xf32>
    %16 = vector.extract_strided_slice %14 {offsets = [0, 384], sizes = [8, 384], strides = [1, 1]} : vector<8x768xf32> to vector<8x384xf32>
    %17 = vector.extract_strided_slice %15 {offsets = [0, 0], sizes = [8, 128], strides = [1, 1]} : vector<8x384xf32> to vector<8x128xf32>
    %18 = vector.extract_strided_slice %16 {offsets = [0, 0], sizes = [8, 128], strides = [1, 1]} : vector<8x384xf32> to vector<8x128xf32>
    %19 = arith.addf %17, %18 : vector<8x128xf32>
    %20 = arith.negf %19 : vector<8x128xf32>
    %21 = math.exp %20 : vector<8x128xf32>
    %cst_10 = arith.constant 1.000000e+00 : f32
    %22 = vector.broadcast %cst_10 : f32 to vector<8x128xf32>
    %23 = arith.addf %22, %21 : vector<8x128xf32>
    %24 = arith.divf %22, %23 : vector<8x128xf32>
    %25 = vector.extract_strided_slice %15 {offsets = [0, 128], sizes = [8, 128], strides = [1, 1]} : vector<8x384xf32> to vector<8x128xf32>
    %26 = vector.extract_strided_slice %16 {offsets = [0, 128], sizes = [8, 128], strides = [1, 1]} : vector<8x384xf32> to vector<8x128xf32>
    %27 = arith.addf %25, %26 : vector<8x128xf32>
    %28 = arith.negf %27 : vector<8x128xf32>
    %29 = math.exp %28 : vector<8x128xf32>
    %cst_11 = arith.constant 1.000000e+00 : f32
    %30 = vector.broadcast %cst_11 : f32 to vector<8x128xf32>
    %31 = arith.addf %30, %29 : vector<8x128xf32>
    %32 = arith.divf %30, %31 : vector<8x128xf32>
    %33 = vector.extract_strided_slice %15 {offsets = [0, 256], sizes = [8, 128], strides = [1, 1]} : vector<8x384xf32> to vector<8x128xf32>
    %34 = vector.extract_strided_slice %16 {offsets = [0, 256], sizes = [8, 128], strides = [1, 1]} : vector<8x384xf32> to vector<8x128xf32>
    %35 = arith.mulf %24, %34 : vector<8x128xf32>
    %36 = arith.addf %33, %35 : vector<8x128xf32>
    %37 = math.tanh %36 : vector<8x128xf32>
    %cst_12 = arith.constant 1.000000e+00 : f32
    %38 = vector.broadcast %cst_12 : f32 to vector<8x128xf32>
    %39 = arith.subf %38, %32 : vector<8x128xf32>
    %40 = arith.mulf %39, %37 : vector<8x128xf32>
    %41 = arith.mulf %32, %8 : vector<8x128xf32>
    %42 = arith.addf %40, %41 : vector<8x128xf32>
    %c0_13 = arith.constant 0 : index
    %c0_14 = arith.constant 0 : index
    %43 = vector.load %arg6[%c0_13, %c0_14] : memref<8x128xf32, #tpu.memory_space<vmem>>, vector<8x128xf32>
    tpu.vector_store %arg6[%c0_13, %c0_14], %42 {strides = array<i32>} : memref<8x128xf32, #tpu.memory_space<vmem>>, vector<8x128xf32>,
    return
  }
  func.func @transform_0(%arg0: i32) -> (i32, i32) {
    %c0_i32 = arith.constant 0 : i32
    %c0_i32_0 = arith.constant 0 : i32
    return %arg0, %c0_i32 : i32, i32
  }
  func.func @transform_1(%arg0: i32) -> (i32, i32) {
    %c0_i32 = arith.constant 0 : i32
    %c0_i32_0 = arith.constant 0 : i32
    %c0_i32_1 = arith.constant 0 : i32
    return %c0_i32, %c0_i32_0 : i32, i32
  }
  func.func @transform_2(%arg0: i32) -> (i32, i32) {
    %c0_i32 = arith.constant 0 : i32
    %c0_i32_0 = arith.constant 0 : i32
    return %arg0, %c0_i32 : i32, i32
  }
  func.func @transform_3(%arg0: i32) -> (i32, i32) {
    %c0_i32 = arith.constant 0 : i32
    %c0_i32_0 = arith.constant 0 : i32
    %c0_i32_1 = arith.constant 0 : i32
    return %c0_i32, %c0_i32_0 : i32, i32
  }
  func.func @transform_4(%arg0: i32) -> (i32, i32) {
    %c0_i32 = arith.constant 0 : i32
    %c0_i32_0 = arith.constant 0 : i32
    %c0_i32_1 = arith.constant 0 : i32
    return %c0_i32, %c0_i32_0 : i32, i32
  }
  func.func @transform_5(%arg0: i32) -> (i32, i32) {
    %c0_i32 = arith.constant 0 : i32
    %c0_i32_0 = arith.constant 0 : i32
    return %arg0, %c0_i32 : i32, i32
  }
}

</mosaic_0001>

<bundles_post_ra>
// kernel: tpu_custom_call.1
= control target key start
LH: loop header
LB: loop body
LE: loop exit
PB: predicated region body
PF: predicated region fallthrough
CT: control target
= control target key end

     0   :  { %10 = vsyncpa [#allocation3], 0  ;;  %s826_s0 = inlined_call_operand.vmem [shape: s32[8,1], index: 0, kind: input, shape index: {}]   ;;  %s827_s1 = inlined_call_operand.hbm [shape: f32[128,128], index: 1, kind: input, shape index: {}]   ;;  %s828_s2 = inlined_call_operand.vmem [shape: f32[8,128], index: 2, kind: input, shape index: {}]   ;;  %s829_s3 = inlined_call_operand.hbm [shape: f32[256,768], index: 3, kind: input, shape index: {}]   ;;  %s830_s4 = inlined_call_operand.hbm [shape: f32[1,768], index: 4, kind: input, shape index: {}]   ;;  %s831_s5 = inlined_call_operand.hbm [shape: f32[8,128], index: 5, kind: output, shape index: {}]  }
   0x1   :  { %11 = vsyncpa [#allocation6], 0  ;;  %s34_s20 = sshll.u32 %s829_s3, 4  ;;  %s35_s20 = int_to_ptr.hbm [resolvable:$true] %s34_s20 }
   0x2   :  { %12 = vsyncpa [#allocation4], 0  ;;  %s751_s21 = smov [#allocation5]   ;;  %s19_s25 = sshll.u32 %s827_s1, 4  ;;  %s20_s25 = int_to_ptr.hbm [resolvable:$true] %s19_s25 }
   0x3   :  { %s36_s22 = sshll.u32 %s751_s21, 4  ;;  %s752_s26 = smov 768   ;;  %s37_s22 = int_to_ptr.vmem [resolvable:$true] %s36_s22 }
   0x4   :  { %s753_s27 = smov 48   ;;  %s754_s28 = smov [#allocation2]  }
   0x5   :  { %42 = dma.hbm_to_vmem [thread:$0]  %s35_s20, 24576, %s37_s22, [#allocation6], %s752_s26, %s752_s26, %s753_s27  }
   0x6   :  { %s21_s29 = sshll.u32 %s754_s28, 4  ;;  %s755_s30 = smov 128   ;;  %s22_s29 = int_to_ptr.vmem [resolvable:$true] %s21_s29 }
   0x7   :  { %s756_s6 = smov 8   ;;  %s48_s8 = sshll.u32 %s830_s4, 4  ;;  %s49_s8 = int_to_ptr.hbm [resolvable:$true] %s48_s8 }
   0x8   :  { %27 = dma.hbm_to_vmem [thread:$0]  %s20_s25, 2048, %s22_s29, [#allocation3], %s755_s30, %s755_s30, %s756_s6  }
   0x9   :  { %s757_s9 = smov [#allocation7]  }
   0xa   :  { %s50_s10 = sshll.u32 %s757_s9, 4  ;;  %s51_s10 = int_to_ptr.vmem [resolvable:$true] %s50_s10 }
   0xb   :  { %53 = dma.hbm_to_vmem [thread:$0]  %s49_s8, 96, %s51_s10, [#allocation6]  }
   0xc   :  { %745 = dma.done.wait [#allocation3], 2048  }
   0xd   :  { %746 = vsyncadd [#allocation3], 4294965248 }
   0xe   :  { %747 = dma.done.wait [#allocation6], 24672  }
   0xf   :  { %748 = vsyncadd [#allocation6], 4294942624  ;;  %v758_v0 = vmov 0   ;;  %v66_v1 = vld [vmem:[%s826_s0] sm:$0xff]  ;;  %v90_v2 = vld [vmem:[#allocation2 + $0x78] sm:$0xff]  ;;  %s613_s15 = sshll.u32 %s831_s5, 4  ;;  %s614_s15 = int_to_ptr.hbm [resolvable:$true] %s613_s15 }
  0x10   :  { %638 = vset.pattern.permute.xlu0 %v758_v0  ;;  %v89_v3 = vld [vmem:[#allocation2 + $0x70] sm:$0xff]  ;;  %91 = vmatpush.msra.mxu0 %v90_v2  ;;  %v88_v4 = vld [vmem:[#allocation2 + $0x68] sm:$0xff]  ;;  %v87_v5 = vld [vmem:[#allocation2 + $0x60] sm:$0xff]  ;;  %v67_v2 = vlaneseq }
  0x11   :  { %70 = vperm.xlu0 %638, %v66_v1   ;;  %v86_v6 = vld [vmem:[#allocation2 + $0x58] sm:$0xff]  ;;  %v85_v7 = vld [vmem:[#allocation2 + $0x50] sm:$0xff]  ;;  %v84_v8 = vld [vmem:[#allocation2 + $0x48] sm:$0xff] }
  0x12   :  { %92 = vmatpush.msra.mxu0 %v89_v3  ;;  %v83_v9 = vld [vmem:[#allocation2 + $0x40] sm:$0xff]  ;;  %v82_v10 = vld [vmem:[#allocation2 + $0x38] sm:$0xff]  ;;  %v81_v11 = vld [vmem:[#allocation2 + $0x30] sm:$0xff] }
  0x13   :  { %v80_v12 = vld [vmem:[#allocation2 + $0x28] sm:$0xff]  ;;  %v79_v13 = vld [vmem:[#allocation2 + $0x20] sm:$0xff]  ;;  %v78_v14 = vld [vmem:[#allocation2 + $0x18] sm:$0xff] }
  0x14   :  { %93 = vmatpush.msra.mxu0 %v88_v4  ;;  %v77_v15 = vld [vmem:[#allocation2 + $0x10] sm:$0xff]  ;;  %v76_v16 = vld [vmem:[#allocation2 + $0x8] sm:$0xff]  ;;  %v75_v17 = vld [vmem:[#allocation2] sm:$0xff] }
  0x15   :  { %v298_v18 = vld [vmem:[#allocation5 + $0x5d0] sm:$0xff]  ;;  %v292_v19 = vld [vmem:[#allocation5 + $0x5a0] sm:$0xff]  ;;  %v203_v21 = vld [vmem:[#allocation5 + $0x2d8] sm:$0xff] }
  0x16   :  { %94 = vmatpush.msra.mxu0 %v87_v5  ;;  %v202_v20 = vld [vmem:[#allocation5 + $0x2d0] sm:$0xff]  ;;  %338 = vmatpush.msra.mxu2 %v298_v18  ;;  %v196_v22 = vld [vmem:[#allocation5 + $0x2a0] sm:$0xff]  ;;  %v197_v24 = vld [vmem:[#allocation5 + $0x2a8] sm:$0xff] }
  0x17   :  { %318 = vmatpush.msra.mxu1 %v202_v20  ;;  %v286_v23 = vld [vmem:[#allocation5 + $0x570] sm:$0xff]  ;;  %358 = vmatpush.msra.mxu3 %v203_v21  ;;  %v191_v26 = vld [vmem:[#allocation5 + $0x278] sm:$0xff]  ;;  %v280_v27 = vld [vmem:[#allocation5 + $0x540] sm:$0xff] }
  0x18   :  { %95 = vmatpush.msra.mxu0 %v86_v6  ;;  %v190_v25 = vld [vmem:[#allocation5 + $0x270] sm:$0xff]  ;;  %339 = vmatpush.msra.mxu2 %v292_v19  ;;  %v184_v28 = vld [vmem:[#allocation5 + $0x240] sm:$0xff]  ;;  %v185_v29 = vld [vmem:[#allocation5 + $0x248] sm:$0xff] }
  0x19   :  { %319 = vmatpush.msra.mxu1 %v196_v22  ;;  %359 = vmatpush.msra.mxu3 %v197_v24  ;;  %v299_v30 = vld [vmem:[#allocation5 + $0x5d8] sm:$0xff]  ;;  %v274_v31 = vld [vmem:[#allocation5 + $0x510] sm:$0xff]  ;;  %v293_v34 = vld [vmem:[#allocation5 + $0x5a8] sm:$0xff]  ;;  %v759_v22 = vmov 1.0  }
  0x1a   :  { %96 = vmatpush.msra.mxu0 %v85_v7  ;;  %340 = vmatpush.msra.mxu2 %v286_v23  ;;  %v178_v32 = vld [vmem:[#allocation5 + $0x210] sm:$0xff]  ;;  %v179_v33 = vld [vmem:[#allocation5 + $0x218] sm:$0xff]  ;;  %v268_v35 = vld [vmem:[#allocation5 + $0x4e0] sm:$0xff] }
  0x1b   :  { %320 = vmatpush.msra.mxu1 %v190_v25  ;;  %360 = vmatpush.msra.mxu3 %v191_v26  ;;  %v172_v36 = vld [vmem:[#allocation5 + $0x1e0] sm:$0xff]  ;;  %v287_v37 = vld [vmem:[#allocation5 + $0x578] sm:$0xff]  ;;  %v173_v38 = vld [vmem:[#allocation5 + $0x1e8] sm:$0xff] }
  0x1c   :  { %97 = vmatpush.msra.mxu0 %v84_v8  ;;  %341 = vmatpush.msra.mxu2 %v280_v27  ;;  %v281_v39 = vld [vmem:[#allocation5 + $0x548] sm:$0xff]  ;;  %v262_v40 = vld [vmem:[#allocation5 + $0x4b0] sm:$0xff]  ;;  %v167_v42 = vld [vmem:[#allocation5 + $0x1b8] sm:$0xff] }
  0x1d   :  { %321 = vmatpush.msra.mxu1 %v184_v28  ;;  %361 = vmatpush.msra.mxu3 %v185_v29  ;;  %v166_v41 = vld [vmem:[#allocation5 + $0x1b0] sm:$0xff]  ;;  %v275_v43 = vld [vmem:[#allocation5 + $0x518] sm:$0xff]  ;;  %v256_v44 = vld [vmem:[#allocation5 + $0x480] sm:$0xff] }
  0x1e   :  { %98 = vmatpush.msra.mxu0 %v83_v9  ;;  %342 = vmatpush.msra.mxu2 %v274_v31  ;;  %v160_v45 = vld [vmem:[#allocation5 + $0x180] sm:$0xff]  ;;  %v161_v46 = vld [vmem:[#allocation5 + $0x188] sm:$0xff]  ;;  %v250_v48 = vld [vmem:[#allocation5 + $0x450] sm:$0xff] }
  0x1f   :  { %322 = vmatpush.msra.mxu1 %v178_v32  ;;  %362 = vmatpush.msra.mxu3 %v179_v33  ;;  %v269_v47 = vld [vmem:[#allocation5 + $0x4e8] sm:$0xff]  ;;  %v154_v49 = vld [vmem:[#allocation5 + $0x150] sm:$0xff]  ;;  %v155_v50 = vld [vmem:[#allocation5 + $0x158] sm:$0xff] }
  0x20   :  { %99 = vmatpush.msra.mxu0 %v82_v10  ;;  %343 = vmatpush.msra.mxu2 %v268_v35  ;;  %v263_v51 = vld [vmem:[#allocation5 + $0x4b8] sm:$0xff]  ;;  %v244_v52 = vld [vmem:[#allocation5 + $0x420] sm:$0xff]  ;;  %v149_v54 = vld [vmem:[#allocation5 + $0x128] sm:$0xff] }
  0x21   :  { %323 = vmatpush.msra.mxu1 %v172_v36  ;;  %363 = vmatpush.msra.mxu3 %v173_v38  ;;  %v148_v53 = vld [vmem:[#allocation5 + $0x120] sm:$0xff]  ;;  %v257_v55 = vld [vmem:[#allocation5 + $0x488] sm:$0xff]  ;;  %v238_v56 = vld [vmem:[#allocation5 + $0x3f0] sm:$0xff] }
  0x22   :  { %100 = vmatpush.msra.mxu0 %v81_v11  ;;  %344 = vmatpush.msra.mxu2 %v262_v40  ;;  %v142_v57 = vld [vmem:[#allocation5 + $0xf0] sm:$0xff]  ;;  %v143_v58 = vld [vmem:[#allocation5 + $0xf8] sm:$0xff]  ;;  %v232_v60 = vld [vmem:[#allocation5 + $0x3c0] sm:$0xff]  ;;  %v68_v11 = vand.u32 127, %v67_v2 }
  0x23   :  { %324 = vmatpush.msra.mxu1 %v166_v41  ;;  %364 = vmatpush.msra.mxu3 %v167_v42  ;;  %v251_v59 = vld [vmem:[#allocation5 + $0x458] sm:$0xff]  ;;  %v136_v61 = vld [vmem:[#allocation5 + $0xc0] sm:$0xff]  ;;  %v137_v62 = vld [vmem:[#allocation5 + $0xc8] sm:$0xff] }
  0x24   :  { %101 = vmatpush.msra.mxu0 %v80_v12  ;;  %345 = vmatpush.msra.mxu2 %v256_v44  ;;  %v245_v63 = vld [vmem:[#allocation5 + $0x428] sm:$0xff]  ;;  %v226_v0 = vld [vmem:[#allocation5 + $0x390] sm:$0xff]  ;;  %v131_v3 = vld [vmem:[#allocation5 + $0x98] sm:$0xff] }
  0x25   :  { %325 = vmatpush.msra.mxu1 %v160_v45  ;;  %365 = vmatpush.msra.mxu3 %v161_v46  ;;  %v130_v1 = vld [vmem:[#allocation5 + $0x90] sm:$0xff]  ;;  %v239_v4 = vld [vmem:[#allocation5 + $0x3f8] sm:$0xff]  ;;  %v220_v5 = vld [vmem:[#allocation5 + $0x360] sm:$0xff] }
  0x26   :  { %102 = vmatpush.msra.mxu0 %v79_v13  ;;  %346 = vmatpush.msra.mxu2 %v250_v48  ;;  %v124_v6 = vld [vmem:[#allocation5 + $0x60] sm:$0xff]  ;;  %v125_v7 = vld [vmem:[#allocation5 + $0x68] sm:$0xff]  ;;  %v214_v9 = vld [vmem:[#allocation5 + $0x330] sm:$0xff] }
  0x27   :  { %326 = vmatpush.msra.mxu1 %v154_v49  ;;  %366 = vmatpush.msra.mxu3 %v155_v50  ;;  %v233_v8 = vld [vmem:[#allocation5 + $0x3c8] sm:$0xff]  ;;  %v118_v10 = vld [vmem:[#allocation5 + $0x30] sm:$0xff]  ;;  %v119_v12 = vld [vmem:[#allocation5 + $0x38] sm:$0xff] }
  0x28   :  { %103 = vmatpush.msra.mxu0 %v78_v14  ;;  %347 = vmatpush.msra.mxu2 %v244_v52  ;;  %v227_v13 = vld [vmem:[#allocation5 + $0x398] sm:$0xff]  ;;  %v208_v14 = vld [vmem:[#allocation5 + $0x300] sm:$0xff]  ;;  %v113_v18 = vld [vmem:[#allocation5 + $0x8] sm:$0xff] }
  0x29   :  { %327 = vmatpush.msra.mxu1 %v148_v53  ;;  %367 = vmatpush.msra.mxu3 %v149_v54  ;;  %v204_v19 = vld [vmem:[#allocation5 + $0x2e0] sm:$0xff]  ;;  %v294_v20 = vld [vmem:[#allocation5 + $0x5b0] sm:$0xff]  ;;  %v205_v21 = vld [vmem:[#allocation5 + $0x2e8] sm:$0xff] }
  0x2a   :  { %104 = vmatpush.msra.mxu0 %v77_v15  ;;  %348 = vmatpush.msra.mxu2 %v238_v56  ;;  %v112_v15 = vld [vmem:[#allocation5] sm:$0xff]  ;;  %v198_v23 = vld [vmem:[#allocation5 + $0x2b0] sm:$0xff]  ;;  %v221_v24 = vld [vmem:[#allocation5 + $0x368] sm:$0xff] }
  0x2b   :  { %328 = vmatpush.msra.mxu1 %v142_v57  ;;  %368 = vmatpush.msra.mxu3 %v143_v58  ;;  %v288_v25 = vld [vmem:[#allocation5 + $0x580] sm:$0xff]  ;;  %v199_v26 = vld [vmem:[#allocation5 + $0x2b8] sm:$0xff]  ;;  %v282_v29 = vld [vmem:[#allocation5 + $0x550] sm:$0xff] }
  0x2c   :  { %105 = vmatpush.msra.mxu0 %v76_v16  ;;  %349 = vmatpush.msra.mxu2 %v232_v60  ;;  %v300_v16 = vld [vmem:[#allocation5 + $0x5e0] sm:$0xff]  ;;  %v215_v28 = vld [vmem:[#allocation5 + $0x338] sm:$0xff]  ;;  %v186_v31 = vld [vmem:[#allocation5 + $0x250] sm:$0xff] }
  0x2d   :  { %329 = vmatpush.msra.mxu1 %v136_v61  ;;  %369 = vmatpush.msra.mxu3 %v137_v62  ;;  %v192_v27 = vld [vmem:[#allocation5 + $0x280] sm:$0xff]  ;;  %v209_v32 = vld [vmem:[#allocation5 + $0x308] sm:$0xff]  ;;  %v295_v40 = vld [vmem:[#allocation5 + $0x5b8] sm:$0xff] }
  0x2e   :  { %106 = vmatpush.msra.mxu0 %v75_v17  ;;  %350 = vmatpush.msra.mxu2 %v226_v0  ;;  %v276_v33 = vld [vmem:[#allocation5 + $0x520] sm:$0xff]  ;;  %v301_v36 = vld [vmem:[#allocation5 + $0x5e8] sm:$0xff]  ;;  %v175_v42 = vld [vmem:[#allocation5 + $0x1f8] sm:$0xff] }
  0x2f   :  { %330 = vmatpush.msra.mxu1 %v130_v1  ;;  %370 = vmatpush.msra.mxu3 %v131_v3  ;;  %v180_v35 = vld [vmem:[#allocation5 + $0x220] sm:$0xff]  ;;  %v181_v38 = vld [vmem:[#allocation5 + $0x228] sm:$0xff]  ;;  %v258_v45 = vld [vmem:[#allocation5 + $0x490] sm:$0xff] }
  0x30   :  { %378 = vmatpush.msrb.mxu0 %v299_v30  ;;  %351 = vmatpush.msra.mxu2 %v220_v5  ;;  %v193_v30 = vld [vmem:[#allocation5 + $0x288] sm:$0xff]  ;;  %v264_v41 = vld [vmem:[#allocation5 + $0x4c0] sm:$0xff]  ;;  %v283_v48 = vld [vmem:[#allocation5 + $0x558] sm:$0xff] }
  0x31   :  { %331 = vmatpush.msra.mxu1 %v124_v6  ;;  %371 = vmatpush.msra.mxu3 %v125_v7  ;;  %v289_v44 = vld [vmem:[#allocation5 + $0x588] sm:$0xff]  ;;  %v252_v49 = vld [vmem:[#allocation5 + $0x460] sm:$0xff]  ;;  %v163_v50 = vld [vmem:[#allocation5 + $0x198] sm:$0xff] }
  0x32   :  { %379 = vmatpush.msrb.mxu0 %v293_v34  ;;  %352 = vmatpush.msra.mxu2 %v214_v9  ;;  %v187_v34 = vld [vmem:[#allocation5 + $0x258] sm:$0xff]  ;;  %v169_v46 = vld [vmem:[#allocation5 + $0x1c8] sm:$0xff]  ;;  %v246_v53 = vld [vmem:[#allocation5 + $0x430] sm:$0xff] }
  0x33   :  { %332 = vmatpush.msra.mxu1 %v118_v10  ;;  %372 = vmatpush.msra.mxu3 %v119_v12  ;;  %v277_v52 = vld [vmem:[#allocation5 + $0x528] sm:$0xff]  ;;  %v271_v56 = vld [vmem:[#allocation5 + $0x4f8] sm:$0xff]  ;;  %v240_v57 = vld [vmem:[#allocation5 + $0x400] sm:$0xff] }
  0x34   :  { %380 = vmatpush.msrb.mxu0 %v287_v37  ;;  %353 = vmatpush.msra.mxu2 %v208_v14  ;;  %v270_v37 = vld [vmem:[#allocation5 + $0x4f0] sm:$0xff]  ;;  %v157_v54 = vld [vmem:[#allocation5 + $0x168] sm:$0xff]  ;;  %v151_v58 = vld [vmem:[#allocation5 + $0x138] sm:$0xff] }
  0x35   :  { %333 = vmatpush.msra.mxu1 %v112_v15  ;;  %373 = vmatpush.msra.mxu3 %v113_v18  ;;  %v265_v60 = vld [vmem:[#allocation5 + $0x4c8] sm:$0xff]  ;;  %v234_v61 = vld [vmem:[#allocation5 + $0x3d0] sm:$0xff]  ;;  %v259_v0 = vld [vmem:[#allocation5 + $0x498] sm:$0xff] }
  0x36   :  { %381 = vmatpush.msrb.mxu0 %v281_v39  ;;  %418 = vmatpush.msrb.mxu2 %v300_v16  ;;  %v174_v39 = vld [vmem:[#allocation5 + $0x1f0] sm:$0xff]  ;;  %v145_v62 = vld [vmem:[#allocation5 + $0x108] sm:$0xff]  ;;  %v228_v1 = vld [vmem:[#allocation5 + $0x3a0] sm:$0xff] }
  0x37   :  { %398 = vmatpush.msrb.mxu1 %v204_v19  ;;  %438 = vmatpush.msrb.mxu3 %v205_v21  ;;  %v139_v2 = vld [vmem:[#allocation5 + $0xd8] sm:$0xff]  ;;  %v132_v3 = vld [vmem:[#allocation5 + $0xa0] sm:$0xff]  ;;  %v222_v5 = vld [vmem:[#allocation5 + $0x370] sm:$0xff] }
  0x38   :  { %382 = vmatpush.msrb.mxu0 %v275_v43  ;;  %419 = vmatpush.msrb.mxu2 %v294_v20  ;;  %v168_v43 = vld [vmem:[#allocation5 + $0x1c0] sm:$0xff]  ;;  %v133_v6 = vld [vmem:[#allocation5 + $0xa8] sm:$0xff]  ;;  %v126_v7 = vld [vmem:[#allocation5 + $0x70] sm:$0xff] }
  0x39   :  { %399 = vmatpush.msrb.mxu1 %v198_v23  ;;  %439 = vmatpush.msrb.mxu3 %v199_v26  ;;  %v216_v9 = vld [vmem:[#allocation5 + $0x340] sm:$0xff]  ;;  %v127_v10 = vld [vmem:[#allocation5 + $0x78] sm:$0xff]  ;;  %v121_v14 = vld [vmem:[#allocation5 + $0x48] sm:$0xff] }
  0x3a   :  { %383 = vmatpush.msrb.mxu0 %v269_v47  ;;  %420 = vmatpush.msrb.mxu2 %v288_v25  ;;  %v162_v47 = vld [vmem:[#allocation5 + $0x190] sm:$0xff]  ;;  %v120_v12 = vld [vmem:[#allocation5 + $0x40] sm:$0xff]  ;;  %v241_v16 = vld [vmem:[#allocation5 + $0x408] sm:$0xff] }
  0x3b   :  { %400 = vmatpush.msrb.mxu1 %v192_v27  ;;  %440 = vmatpush.msrb.mxu3 %v193_v30  ;;  %v302_v15 = vld [vmem:[#allocation5 + $0x5f0] sm:$0xff]  ;;  %v115_v19 = vld [vmem:[#allocation5 + $0x18] sm:$0xff]  ;;  %v284_v23 = vld [vmem:[#allocation5 + $0x560] sm:$0xff] }
  0x3c   :  { %384 = vmatpush.msrb.mxu0 %v263_v51  ;;  %421 = vmatpush.msrb.mxu2 %v282_v29  ;;  %v156_v51 = vld [vmem:[#allocation5 + $0x160] sm:$0xff]  ;;  %v114_v18 = vld [vmem:[#allocation5 + $0x10] sm:$0xff]  ;;  %v235_v20 = vld [vmem:[#allocation5 + $0x3d8] sm:$0xff] }
  0x3d   :  { %401 = vmatpush.msrb.mxu1 %v186_v31  ;;  %441 = vmatpush.msrb.mxu3 %v187_v34  ;;  %v290_v21 = vld [vmem:[#allocation5 + $0x590] sm:$0xff]  ;;  %v217_v26 = vld [vmem:[#allocation5 + $0x348] sm:$0xff]  ;;  %v272_v27 = vld [vmem:[#allocation5 + $0x500] sm:$0xff] }
  0x3e   :  { %385 = vmatpush.msrb.mxu0 %v257_v55  ;;  %422 = vmatpush.msrb.mxu2 %v276_v33  ;;  %v150_v55 = vld [vmem:[#allocation5 + $0x130] sm:$0xff]  ;;  %v303_v30 = vld [vmem:[#allocation5 + $0x5f8] sm:$0xff]  ;;  %v260_v31 = vld [vmem:[#allocation5 + $0x4a0] sm:$0xff] }
  0x3f   :  { %402 = vmatpush.msrb.mxu1 %v180_v35  ;;  %442 = vmatpush.msrb.mxu3 %v181_v38  ;;  %v278_v25 = vld [vmem:[#allocation5 + $0x530] sm:$0xff]  ;;  %v291_v34 = vld [vmem:[#allocation5 + $0x598] sm:$0xff]  ;;  %v248_v35 = vld [vmem:[#allocation5 + $0x440] sm:$0xff] }
  0x40   :  { %386 = vmatpush.msrb.mxu0 %v251_v59  ;;  %423 = vmatpush.msrb.mxu2 %v270_v37  ;;  %v144_v59 = vld [vmem:[#allocation5 + $0x100] sm:$0xff]  ;;  %v266_v29 = vld [vmem:[#allocation5 + $0x4d0] sm:$0xff]  ;;  %v279_v38 = vld [vmem:[#allocation5 + $0x538] sm:$0xff] }
  0x41   :  { %403 = vmatpush.msrb.mxu1 %v174_v39  ;;  %443 = vmatpush.msrb.mxu3 %v175_v42  ;;  %v254_v33 = vld [vmem:[#allocation5 + $0x470] sm:$0xff]  ;;  %v236_v39 = vld [vmem:[#allocation5 + $0x3e0] sm:$0xff]  ;;  %v267_v42 = vld [vmem:[#allocation5 + $0x4d8] sm:$0xff] }
  0x42   :  { %387 = vmatpush.msrb.mxu0 %v245_v63  ;;  %424 = vmatpush.msrb.mxu2 %v264_v41  ;;  %v138_v63 = vld [vmem:[#allocation5 + $0xd0] sm:$0xff] }
  0x43   :  { %404 = vmatpush.msrb.mxu1 %v168_v43  ;;  %444 = vmatpush.msrb.mxu3 %v169_v46  ;;  %v242_v37 = vld [vmem:[#allocation5 + $0x410] sm:$0xff]  ;;  %v224_v43 = vld [vmem:[#allocation5 + $0x380] sm:$0xff]  ;;  %v255_v46 = vld [vmem:[#allocation5 + $0x478] sm:$0xff] }
  0x44   :  { %388 = vmatpush.msrb.mxu0 %v239_v4  ;;  %425 = vmatpush.msrb.mxu2 %v258_v45  ;;  %v253_v4 = vld [vmem:[#allocation5 + $0x468] sm:$0xff]  ;;  %v230_v41 = vld [vmem:[#allocation5 + $0x3b0] sm:$0xff] }
  0x45   :  { %405 = vmatpush.msrb.mxu1 %v162_v47  ;;  %445 = vmatpush.msrb.mxu3 %v163_v50  ;;  %v218_v45 = vld [vmem:[#allocation5 + $0x350] sm:$0xff]  ;;  %v212_v47 = vld [vmem:[#allocation5 + $0x320] sm:$0xff] }
  0x46   :  { %389 = vmatpush.msrb.mxu0 %v233_v8  ;;  %426 = vmatpush.msrb.mxu2 %v252_v49  ;;  %v247_v8 = vld [vmem:[#allocation5 + $0x438] sm:$0xff]  ;;  %v206_v50 = vld [vmem:[#allocation5 + $0x2f0] sm:$0xff] }
  0x47   :  { %406 = vmatpush.msrb.mxu1 %v156_v51  ;;  %446 = vmatpush.msrb.mxu3 %v157_v54  ;;  %v243_v49 = vld [vmem:[#allocation5 + $0x418] sm:$0xff]  ;;  %v200_v54 = vld [vmem:[#allocation5 + $0x2c0] sm:$0xff] }
  0x48   :  { %390 = vmatpush.msrb.mxu0 %v227_v13  ;;  %427 = vmatpush.msrb.mxu2 %v246_v53  ;;  %v210_v13 = vld [vmem:[#allocation5 + $0x310] sm:$0xff]  ;;  %v207_v51 = vld [vmem:[#allocation5 + $0x2f8] sm:$0xff]  ;;  %v237_v53 = vld [vmem:[#allocation5 + $0x3e8] sm:$0xff] }
  0x49   :  { %407 = vmatpush.msrb.mxu1 %v150_v55  ;;  %447 = vmatpush.msrb.mxu3 %v151_v58  ;;  %v201_v55 = vld [vmem:[#allocation5 + $0x2c8] sm:$0xff]  ;;  %v195_v58 = vld [vmem:[#allocation5 + $0x298] sm:$0xff] }
  0x4a   :  { %391 = vmatpush.msrb.mxu0 %v221_v24  ;;  %428 = vmatpush.msrb.mxu2 %v240_v57  ;;  %v223_v24 = vld [vmem:[#allocation5 + $0x378] sm:$0xff]  ;;  %v194_v57 = vld [vmem:[#allocation5 + $0x290] sm:$0xff] }
  0x4b   :  { %408 = vmatpush.msrb.mxu1 %v144_v59  ;;  %448 = vmatpush.msrb.mxu3 %v145_v62  ;;  %v225_v59 = vld [vmem:[#allocation5 + $0x388] sm:$0xff]  ;;  %v182_v62 = vld [vmem:[#allocation5 + $0x230] sm:$0xff] }
  0x4c   :  { %392 = vmatpush.msrb.mxu0 %v215_v28  ;;  %429 = vmatpush.msrb.mxu2 %v234_v61  ;;  %v211_v28 = vld [vmem:[#allocation5 + $0x318] sm:$0xff]  ;;  %v189_v61 = vld [vmem:[#allocation5 + $0x268] sm:$0xff] }
  0x4d   :  { %409 = vmatpush.msrb.mxu1 %v138_v63  ;;  %449 = vmatpush.msrb.mxu3 %v139_v2  ;;  %v183_v63 = vld [vmem:[#allocation5 + $0x238] sm:$0xff]  ;;  %v177_v2 = vld [vmem:[#allocation5 + $0x208] sm:$0xff] }
  0x4e   :  { %393 = vmatpush.msrb.mxu0 %v209_v32  ;;  %430 = vmatpush.msrb.mxu2 %v228_v1  ;;  %v297_v32 = vld [vmem:[#allocation5 + $0x5c8] sm:$0xff]  ;;  %v176_v1 = vld [vmem:[#allocation5 + $0x200] sm:$0xff] }
  0x4f   :  { %410 = vmatpush.msrb.mxu1 %v132_v3  ;;  %450 = vmatpush.msrb.mxu3 %v133_v6  ;;  %v213_v3 = vld [vmem:[#allocation5 + $0x328] sm:$0xff]  ;;  %v164_v6 = vld [vmem:[#allocation5 + $0x1a0] sm:$0xff] }
  0x50   :  { %431 = vmatpush.msrb.mxu2 %v222_v5  ;;  %v171_v5 = vld [vmem:[#allocation5 + $0x1d8] sm:$0xff] }
  0x51   :  { %411 = vmatpush.msrb.mxu1 %v126_v7  ;;  %451 = vmatpush.msrb.mxu3 %v127_v10  ;;  %v165_v7 = vld [vmem:[#allocation5 + $0x1a8] sm:$0xff]  ;;  %v152_v10 = vld [vmem:[#allocation5 + $0x140] sm:$0xff] }
  0x52   :  { %432 = vmatpush.msrb.mxu2 %v216_v9  ;;  %v159_v9 = vld [vmem:[#allocation5 + $0x178] sm:$0xff] }
  0x53   :  { %412 = vmatpush.msrb.mxu1 %v120_v12  ;;  %452 = vmatpush.msrb.mxu3 %v121_v14  ;;  %v153_v12 = vld [vmem:[#allocation5 + $0x148] sm:$0xff]  ;;  %v147_v14 = vld [vmem:[#allocation5 + $0x118] sm:$0xff] }
  0x54   :  { %433 = vmatpush.msrb.mxu2 %v210_v13  ;;  %v146_v13 = vld [vmem:[#allocation5 + $0x110] sm:$0xff] }
  0x55   :  { %413 = vmatpush.msrb.mxu1 %v114_v18  ;;  %453 = vmatpush.msrb.mxu3 %v115_v19  ;;  %v135_v18 = vld [vmem:[#allocation5 + $0xb8] sm:$0xff]  ;;  %v128_v19 = vld [vmem:[#allocation5 + $0x80] sm:$0xff] }
  0x83   :  { %v71_v17 = vpop.permute.xlu0 %70 }
  0x84   :  { %vm72_vm0 = vcmp.eq.s32.totalorder %v71_v17, %v68_v11  ;;  %v806_v11 = vld [vmem:[%s828_s2] sm:$0xff]  ;;  %s760_s2 = smov [#allocation8]  }
  0x85   :  { %625 = vmatmul.msk.f32.vlgmr.msra.gmra.mxu0 %vm72_vm0, %v759_v22  ;;  %354 = vmatmul.f32.vlgmr.msra.gmra.mxu2 %v806_v11  ;;  %v296_v17 = vld [vmem:[#allocation5 + $0x5c0] sm:$0xff]  ;;  %v229_v22 = vld [vmem:[#allocation5 + $0x3a8] sm:$0xff]  ;;  %s611_s12 = sshll.u32 %s760_s2, 4  ;;  %s612_s12 = int_to_ptr.vmem [resolvable:$true] %s611_s12 }
  0x86   :  { %458 = vmatpush.msra.mxu0 %v301_v36  ;;  %498 = vmatpush.msra.mxu2 %v302_v15  ;;  %v285_v36 = vld [vmem:[#allocation5 + $0x568] sm:$0xff]  ;;  %v140_v15 = vld [vmem:[#allocation5 + $0xe0] sm:$0xff] }
  0x88   :  { %459 = vmatpush.msra.mxu0 %v295_v40  ;;  %499 = vmatpush.msra.mxu2 %v296_v17  ;;  %v273_v40 = vld [vmem:[#allocation5 + $0x508] sm:$0xff]  ;;  %v134_v17 = vld [vmem:[#allocation5 + $0xb0] sm:$0xff] }
  0x8a   :  { %460 = vmatpush.msra.mxu0 %v289_v44  ;;  %500 = vmatpush.msra.mxu2 %v290_v21  ;;  %v261_v44 = vld [vmem:[#allocation5 + $0x4a8] sm:$0xff]  ;;  %v122_v21 = vld [vmem:[#allocation5 + $0x50] sm:$0xff] }
  0x8c   :  { %461 = vmatpush.msra.mxu0 %v283_v48  ;;  %501 = vmatpush.msra.mxu2 %v284_v23  ;;  %v249_v48 = vld [vmem:[#allocation5 + $0x448] sm:$0xff]  ;;  %v116_v23 = vld [vmem:[#allocation5 + $0x20] sm:$0xff] }
  0x8d   :  { %394 = vmatmul.f32.vlgmr.msrb.gmra.mxu0 %v806_v11  ;;  %434 = vmatmul.f32.vlgmr.msrb.gmra.mxu2 %v806_v11 }
  0x8e   :  { %462 = vmatpush.msra.mxu0 %v277_v52  ;;  %502 = vmatpush.msra.mxu2 %v278_v25 }
  0x90   :  { %463 = vmatpush.msra.mxu0 %v271_v56  ;;  %503 = vmatpush.msra.mxu2 %v272_v27  ;;  %v231_v56 = vld [vmem:[#allocation5 + $0x3b8] sm:$0xff] }
  0x92   :  { %464 = vmatpush.msra.mxu0 %v265_v60  ;;  %504 = vmatpush.msra.mxu2 %v266_v29  ;;  %v188_v60 = vld [vmem:[#allocation5 + $0x260] sm:$0xff] }
  0x94   :  { %465 = vmatpush.msra.mxu0 %v259_v0  ;;  %505 = vmatpush.msra.mxu2 %v260_v31  ;;  %v219_v0 = vld [vmem:[#allocation5 + $0x358] sm:$0xff] }
  0x96   :  { %466 = vmatpush.msra.mxu0 %v253_v4  ;;  %506 = vmatpush.msra.mxu2 %v254_v33  ;;  %v170_v4 = vld [vmem:[#allocation5 + $0x1d0] sm:$0xff] }
  0x98   :  { %467 = vmatpush.msra.mxu0 %v247_v8  ;;  %507 = vmatpush.msra.mxu2 %v248_v35  ;;  %v158_v8 = vld [vmem:[#allocation5 + $0x170] sm:$0xff] }
  0x9a   :  { %468 = vmatpush.msra.mxu0 %v241_v16  ;;  %508 = vmatpush.msra.mxu2 %v242_v37  ;;  %v141_v16 = vld [vmem:[#allocation5 + $0xe8] sm:$0xff] }
  0x9c   :  { %469 = vmatpush.msra.mxu0 %v235_v20  ;;  %509 = vmatpush.msra.mxu2 %v236_v39  ;;  %v129_v20 = vld [vmem:[#allocation5 + $0x88] sm:$0xff] }
  0x9e   :  { %470 = vmatpush.msra.mxu0 %v229_v22  ;;  %510 = vmatpush.msra.mxu2 %v230_v41  ;;  %v123_v22 = vld [vmem:[#allocation5 + $0x58] sm:$0xff] }
  0xa0   :  { %471 = vmatpush.msra.mxu0 %v223_v24  ;;  %511 = vmatpush.msra.mxu2 %v224_v43  ;;  %v117_v24 = vld [vmem:[#allocation5 + $0x28] sm:$0xff] }
  0xa2   :  { %472 = vmatpush.msra.mxu0 %v217_v26  ;;  %512 = vmatpush.msra.mxu2 %v218_v45  ;;  %v304_v26 = vld [vmem:[#allocation7] sm:$0x3f] }
  0xa4   :  { %473 = vmatpush.msra.mxu0 %v211_v28  ;;  %513 = vmatpush.msra.mxu2 %v212_v47  ;;  %v306_v28 = vperm.slane %v304_v26, 0 }
  0xa5   :  { %474 = vmatmul.f32.vlgmr.msra.gmra.mxu0 %v806_v11  ;;  %514 = vmatmul.f32.vlgmr.msra.gmra.mxu2 %v806_v11 }
  0xa6   :  { %538 = vmatpush.msrb.mxu0 %v303_v30  ;;  %v309_v30 = vperm.slane %v304_v26, 3 }
  0xa8   :  { %539 = vmatpush.msrb.mxu0 %v297_v32 }
  0xaa   :  { %540 = vmatpush.msrb.mxu0 %v291_v34 }
  0xac   :  { %541 = vmatpush.msrb.mxu0 %v285_v36 }
  0xae   :  { %542 = vmatpush.msrb.mxu0 %v279_v38 }
  0xb0   :  { %543 = vmatpush.msrb.mxu0 %v273_v40 }
  0xb2   :  { %544 = vmatpush.msrb.mxu0 %v267_v42  ;;  %v307_v42 = vperm.slane %v304_v26, 1 }
  0xb4   :  { %545 = vmatpush.msrb.mxu0 %v261_v44  ;;  %v310_v44 = vperm.slane %v304_v26, 4 }
  0xb6   :  { %546 = vmatpush.msrb.mxu0 %v255_v46 }
  0xb8   :  { %547 = vmatpush.msrb.mxu0 %v249_v48 }
  0xba   :  { %548 = vmatpush.msrb.mxu0 %v243_v49 }
  0xbc   :  { %549 = vmatpush.msrb.mxu0 %v237_v53 }
  0xbe   :  { %550 = vmatpush.msrb.mxu0 %v231_v56 }
  0xc0   :  { %551 = vmatpush.msrb.mxu0 %v225_v59 }
  0xc2   :  { %552 = vmatpush.msrb.mxu0 %v219_v0  ;;  %v308_v0 = vperm.slane %v304_v26, 2 }
  0xc4   :  { %553 = vmatpush.msrb.mxu0 %v213_v3 }
  0xc5   :  { %554 = vmatmul.f32.vlgmr.msrb.gmra.mxu0 %v806_v11 }
 0x102   :  { %v813_v52 = vpop.f32.mrf.mxu0 }
 0x103   :  { %334 = vmatmul.f32.vlgmr.msra.gmra.mxu1 %v813_v52  ;;  %374 = vmatmul.f32.vlgmr.msra.gmra.mxu3 %v813_v52 }
 0x104   :  { %478 = vmatpush.msra.mxu1 %v206_v50  ;;  %518 = vmatpush.msra.mxu3 %v207_v51 }
 0x106   :  { %479 = vmatpush.msra.mxu1 %v200_v54  ;;  %519 = vmatpush.msra.mxu3 %v201_v55 }
 0x108   :  { %480 = vmatpush.msra.mxu1 %v194_v57  ;;  %520 = vmatpush.msra.mxu3 %v195_v58  ;;  %v355_v32 = vpop.f32.mrf.mxu2  ;;  %v311_v58 = vperm.slane %v304_v26, 5 }
 0x10a   :  { %481 = vmatpush.msra.mxu1 %v188_v60  ;;  %521 = vmatpush.msra.mxu3 %v189_v61  ;;  %v395_v25 = vpop.f32.mrf.mxu0 }
 0x10b   :  { %414 = vmatmul.f32.vlgmr.msrb.gmra.mxu1 %v813_v52  ;;  %454 = vmatmul.f32.vlgmr.msrb.gmra.mxu3 %v813_v52 }
 0x10c   :  { %482 = vmatpush.msra.mxu1 %v182_v62  ;;  %522 = vmatpush.msra.mxu3 %v183_v63 }
 0x10e   :  { %483 = vmatpush.msra.mxu1 %v176_v1  ;;  %523 = vmatpush.msra.mxu3 %v177_v2 }
 0x110   :  { %484 = vmatpush.msra.mxu1 %v170_v4  ;;  %524 = vmatpush.msra.mxu3 %v171_v5  ;;  %v435_v41 = vpop.f32.mrf.mxu2 }
 0x112   :  { %485 = vmatpush.msra.mxu1 %v164_v6  ;;  %525 = vmatpush.msra.mxu3 %v165_v7 }
 0x114   :  { %486 = vmatpush.msra.mxu1 %v158_v8  ;;  %526 = vmatpush.msra.mxu3 %v159_v9 }
 0x116   :  { %487 = vmatpush.msra.mxu1 %v152_v10  ;;  %527 = vmatpush.msra.mxu3 %v153_v12 }
 0x118   :  { %488 = vmatpush.msra.mxu1 %v146_v13  ;;  %528 = vmatpush.msra.mxu3 %v147_v14 }
 0x11a   :  { %489 = vmatpush.msra.mxu1 %v140_v15  ;;  %529 = vmatpush.msra.mxu3 %v141_v16 }
 0x11c   :  { %490 = vmatpush.msra.mxu1 %v134_v17  ;;  %530 = vmatpush.msra.mxu3 %v135_v18 }
 0x11e   :  { %491 = vmatpush.msra.mxu1 %v128_v19  ;;  %531 = vmatpush.msra.mxu3 %v129_v20 }
 0x120   :  { %492 = vmatpush.msra.mxu1 %v122_v21  ;;  %532 = vmatpush.msra.mxu3 %v123_v22 }
 0x122   :  { %493 = vmatpush.msra.mxu1 %v116_v23  ;;  %533 = vmatpush.msra.mxu3 %v117_v24  ;;  %v475_v34 = vpop.f32.mrf.mxu0 }
 0x123   :  { %494 = vmatmul.f32.vlgmr.msra.gmra.mxu1 %v813_v52  ;;  %534 = vmatmul.f32.vlgmr.msra.gmra.mxu3 %v813_v52 }
 0x128   :  { %v515_v48 = vpop.f32.mrf.mxu2 }
 0x142   :  { %v555_v4 = vpop.f32.mrf.mxu0 }
 0x180   :  { %v335_v29 = vpop.f32.mrf.mxu1 }
 0x181   :  { %v336_v31 = vadd.f32 %v335_v29, %v306_v28 }
 0x183   :  { %v356_v36 = vadd.f32 %v355_v32, %v336_v31 }
 0x186   :  { %v375_v27 = vpop.f32.mrf.mxu3 }
 0x187   :  { %v376_v46 = vadd.f32 %v375_v27, %v307_v42 }
 0x188   :  { %v415_v40 = vpop.f32.mrf.mxu1 }
 0x189   :  { %v396_v50 = vadd.f32 %v395_v25, %v376_v46  ;;  %v416_v7 = vadd.f32 %v415_v40, %v308_v0 }
 0x18b   :  { %v436_v12 = vadd.f32 %v435_v41, %v416_v7 }
 0x18e   :  { %v455_v33 = vpop.f32.mrf.mxu3 }
 0x18f   :  { %v456_v35 = vadd.f32 %v455_v33, %v309_v30 }
 0x191   :  { %v476_v37 = vadd.f32 %v475_v34, %v456_v35 }
 0x193   :  { %v558_v38 = vadd.f32 %v476_v37, %v356_v36 }
 0x195   :  { %v626_v39 = vmul.f32 -1.442695, %v558_v38 }
 0x197   :  { %639 = vpow2.f32 %v626_v39 }
 0x19d   :  { %v640_v43 = vpop.eup %639 }
 0x19e   :  { %v562_v45 = vadd.f32 1.0, %v640_v43 }
 0x1a0   :  { %641 = vrcp.f32 %v562_v45  ;;  %v495_v47 = vpop.f32.mrf.mxu1  ;;  %v574_v61 = vand.u32 2147483648, %v562_v45  ;;  %vm568_vm2 = vweird.f32 %v562_v45  ;;  %v572_v62 = vand.u32 2147483647, %v562_v45 }
 0x1a1   :  { %v496_v49 = vadd.f32 %v495_v47, %v310_v44 }
 0x1a2   :  { %v575_v5 = vor.u32 1.1754944e-38, %v574_v61  ;;  %vm573_vm4 = vcmp.eq.f32.partialorder %v572_v62, 8.507059e+37 }
 0x1a3   :  { %v516_v51 = vadd.f32 %v515_v48, %v496_v49 }
 0x1a5   :  { %v578_v52 = vadd.f32 %v516_v51, %v396_v50 }
 0x1a6   :  { %v642_v53 = vpop.eup %641  ;;  %v535_v59 = vpop.f32.mrf.mxu3 }
 0x1a7   :  { %v627_v54 = vmul.f32 -1.442695, %v578_v52  ;;  %v564_v55 = vmul.f32 %v642_v53, %v562_v45  ;;  %vm569_vm1 = vweird.f32 %v642_v53  ;;  %v536_v2 = vadd.f32 %v535_v59, %v311_v58 }
 0x1a8   :  { %vm570_vm3 = vmor %vm568_vm2, %vm569_vm1 }
 0x1a9   :  { %643 = vpow2.f32 %v627_v54  ;;  %v565_v56 = vsub.f32 1.0, %v564_v55  ;;  %v556_v8 = vadd.f32 %v555_v4, %v536_v2 }
 0x1ab   :  { %v566_v57 = vmul.f32 %v642_v53, %v565_v56 }
 0x1ad   :  { %v567_v60 = vadd.f32 %v642_v53, %v566_v57 }
 0x1af   :  { %v644_v63 = vpop.eup %643  ;;  %v571_v3 = vsel %vm570_vm3, %v642_v53, %v567_v60 }
 0x1b0   :  { %v582_v1 = vadd.f32 1.0, %v644_v63  ;;  %v576_v6 = vsel %vm573_vm4, %v575_v5, %v571_v3 }
 0x1b1   :  { %v598_v9 = vmul.f32 %v576_v6, %v556_v8 }
 0x1b2   :  { %645 = vrcp.f32 %v582_v1  ;;  %v594_v16 = vand.u32 2147483648, %v582_v1  ;;  %v592_v18 = vand.u32 2147483647, %v582_v1  ;;  %vm588_vm6 = vweird.f32 %v582_v1 }
 0x1b3   :  { %v599_v14 = vadd.f32 %v598_v9, %v436_v12 }
 0x1b4   :  { %v595_v20 = vor.u32 1.1754944e-38, %v594_v16  ;;  %vm593_vm8 = vcmp.eq.f32.partialorder %v592_v18, 8.507059e+37 }
 0x1b5   :  { %647 = vtanh.f32 %v599_v14 }
 0x1b8   :  { %v646_v10 = vpop.eup %645 }
 0x1b9   :  { %v584_v13 = vmul.f32 %v646_v10, %v582_v1  ;;  %vm589_vm5 = vweird.f32 %v646_v10 }
 0x1ba   :  { %vm590_vm7 = vmor %vm588_vm6, %vm589_vm5 }
 0x1bb   :  { %v585_v15 = vsub.f32 1.0, %v584_v13  ;;  %v648_v24 = vpop.eup %647 }
 0x1bd   :  { %v586_v17 = vmul.f32 %v646_v10, %v585_v15 }
 0x1bf   :  { %v587_v19 = vadd.f32 %v646_v10, %v586_v17 }
 0x1c1   :  { %v591_v21 = vsel %vm590_vm7, %v646_v10, %v587_v19 }
 0x1c2   :  { %v596_v22 = vsel %vm593_vm8, %v595_v20, %v591_v21 }
 0x1c3   :  { %v601_v23 = vsub.f32 1.0, %v596_v22  ;;  %v603_v26 = vmul.f32 %v596_v22, %v806_v11 }
 0x1c5   :  { %v602_v25 = vmul.f32 %v648_v24, %v601_v23 }
 0x1c7   :  { %v604_v27 = vadd.f32 %v603_v26, %v602_v25 }
 0x1c9   :  { %605 = vst [vmem:[#allocation8] sm:$0xff] %v604_v27 }
 0x1ca   :  { %616 = dma.vmem_to_hbm [thread:$0]  %s612_s12, 128, %s614_s15, [#allocation4]  }
 0x1cb   :  { %749 = dma.done.wait [#allocation4], 128  }
 0x1cc   :  { %750 = vsyncadd [#allocation4], 4294967168 }
 0x1cd   :  { %621 = vsyncpa [#allocation3], 1 }
 0x1ce   :  { %622 = vsyncpa [#allocation6], 1 }
 0x1cf   :  { %623 = vsyncpa [#allocation4], 1 }

</bundles_post_ra>
